<compile_context>
chip_gen: v5e
topology: v5e:2x2
jax: 0.10.0
libtpu: 0.0.40
codegen_flags: <defaults>
</compile_context>

<pallas_src>
import functools

import jax
import jax.numpy as jnp
from jax import lax
from jax.experimental import pallas as pl
from jax.experimental.pallas import tpu as pltpu


def _round_up(v, m):
    return -(-v // m) * m


def _auto_tiles(N, E, Fx, Fe, B, budget_bytes=22 << 20, max_lanes=128 * 1024):
    """Pick lane-dense tile sizes so both streams finish in ~the same number of
    chunks and the double-buffered streams + one-hot temporaries fit the VMEM
    budget (conservative for v7x's 64 MiB physical VMEM)."""
    b_pad = _round_up(max(B, 1), 8)
    per_node_lane = 8 * (Fx + 1) + 12 * b_pad   # 2x f32 stream bufs + iota + one-hot
    per_edge_lane = 8 * (Fe + 1) + 12 * b_pad
    chunks = 1
    while True:
        tn = min(_round_up(pl.cdiv(max(N, 1), chunks), 128), max_lanes)
        te = min(_round_up(pl.cdiv(max(E, 1), chunks), 128), max_lanes)
        if per_node_lane * tn + per_edge_lane * te <= budget_bytes or (tn == 128 and te == 128):
            return tn, te
        chunks += 1


def _scatter_sum_kernel(xt_ref, nb_ref, et_ref, eb_ref,
                        node_part_ref, edge_part_ref,
                        iota_n_ref, iota_e_ref,
                        *, n_node_chunks, n_edge_chunks, chunks_per_core):
    """One streamed chunk: scatter_sum == one-hot [B, T] contracted on the lane
    axis against the feature-major tile [F, T]; accumulate into this core's
    resident output partial ([B, F])."""
    c = pl.program_id(0)          # core (parallel axis)
    i = pl.program_id(1)          # chunk within the core (arbitrary axis)
    chunk = c * chunks_per_core + i

    B = node_part_ref.shape[0]
    TN = xt_ref.shape[1]
    TE = et_ref.shape[1]

    @pl.when(i == 0)
    def _init():
        node_part_ref[...] = jnp.zeros_like(node_part_ref)
        edge_part_ref[...] = jnp.zeros_like(edge_part_ref)
        # Hoisted one-hot row indices: written once per core, reused every step.
        iota_n_ref[...] = lax.broadcasted_iota(jnp.int32, (B, TN), 0)
        iota_e_ref[...] = lax.broadcasted_iota(jnp.int32, (B, TE), 0)

    # Contract the long (lane) axis of both operands -> no transpose anywhere.
    dims = (((1,), (1,)), ((), ()))

    # Padded elements carry graph_id == B (out of range) -> all-zero one-hot
    # column -> contribute exactly zero.  Streams past their own chunk count
    # are gated off entirely (their clamped index_map also skips the DMA).
    @pl.when(chunk < n_node_chunks)
    def _node():
        oh = (nb_ref[...] == iota_n_ref[...]).astype(xt_ref.dtype)       # [B, TN]
        node_part_ref[...] += lax.dot_general(
            oh, xt_ref[...], dims, preferred_element_type=jnp.float32)   # [B, Fx]

    @pl.when(chunk < n_edge_chunks)
    def _edge():
        oh = (eb_ref[...] == iota_e_ref[...]).astype(et_ref.dtype)       # [B, TE]
        edge_part_ref[...] += lax.dot_general(
            oh, et_ref[...], dims, preferred_element_type=jnp.float32)   # [B, Fe]


def _epilogue_kernel(np_ref, ep_ref, u_ref, w1_ref, w2_ref, w3_ref, b_ref, out_ref):
    """Combine per-core partials, then concat([node_sum, edge_sum, u]) @ W + b
    with W pre-split into row blocks (== concat), followed by ReLU."""
    node_sum = jnp.sum(np_ref[...], axis=0)       # [B, Fx]
    edge_sum = jnp.sum(ep_ref[...], axis=0)       # [B, Fe]
    y = (jnp.dot(node_sum, w1_ref[...], preferred_element_type=jnp.float32)
         + jnp.dot(edge_sum, w2_ref[...], preferred_element_type=jnp.float32)
         + jnp.dot(u_ref[...].astype(jnp.float32), w3_ref[...],
                   preferred_element_type=jnp.float32)
         + b_ref[...])
    out_ref[...] = jnp.maximum(y, 0.0).astype(out_ref.dtype)   # ReLU (activation=True)


def global_model_forward(x, edge_index, edge_attr, u, batch, W, b,
                         *, tile_n=None, tile_e=None):
    """x:[N,Fx], edge_index:[2,E] int32, edge_attr:[E,Fe], u:[B,Fu],
    batch:[N] int32, W:[Fx+Fe+Fu, out_dim], b:[out_dim]  ->  [B, out_dim]."""
    N, Fx = x.shape
    E, Fe = edge_attr.shape
    B, Fu = u.shape
    out_dim = W.shape[1]

    if tile_n is None or tile_e is None:
        a_tn, a_te = _auto_tiles(N, E, Fx, Fe, B)
        tile_n = tile_n if tile_n is not None else a_tn
        tile_e = tile_e if tile_e is not None else a_te
    assert tile_n % 128 == 0 and tile_e % 128 == 0, "tiles must be lane-aligned"

    # NOTE: the one-hot / accumulators scale with B; for B beyond a few hundred
    # graphs, tile B as an extra grid axis instead of one giant one-hot per tile.

    # ---- XLA-side glue (layout plumbing, not compute) -----------------------
    batch = batch.astype(jnp.int32)
    edge_batch = batch[edge_index[1]]                     # [E] graph id per edge

    n_node_chunks = pl.cdiv(N, tile_n)
    n_edge_chunks = pl.cdiv(E, tile_e)
    n_chunks = max(n_node_chunks, n_edge_chunks)
    num_cores = 2 if n_chunks > 1 else 1                  # v7x: 2 TCs; v5e/v6e: runs serially
    chunks_per_core = pl.cdiv(n_chunks, num_cores)

    # Each stream padded only to its OWN chunk count (no cross-stream padding).
    N_pad = n_node_chunks * tile_n
    E_pad = n_edge_chunks * tile_e

    # TODO(synk): have the upstream producer emit feature-major x / edge_attr so
    # this transpose+pad copy (an extra HBM round trip on the dominant arrays)
    # disappears entirely.
    x_t = jnp.zeros((Fx, N_pad), x.dtype).at[:, :N].set(x.T)
    e_t = jnp.zeros((Fe, E_pad), edge_attr.dtype).at[:, :E].set(edge_attr.T)
    nb = jnp.full((1, N_pad), B, jnp.int32).at[0, :N].set(batch)
    eb = jnp.full((1, E_pad), B, jnp.int32).at[0, :E].set(edge_batch)

    # Clamped index maps: once a stream is exhausted, the block index stops
    # changing -> the pipeline skips the DMA; compute is gated in-kernel.
    node_map = lambda c, i: (0, jnp.minimum(c * chunks_per_core + i, n_node_chunks - 1))
    edge_map = lambda c, i: (0, jnp.minimum(c * chunks_per_core + i, n_edge_chunks - 1))

    # Explicit VMEM budget: double-buffered streams + iota scratch + one-hot
    # temporaries (+ margin).  v5e's default scoped limit is only 16 MiB.
    b_pad = _round_up(B, 8)
    vmem_need = (2 * 4 * ((Fx + 1) * tile_n + (Fe + 1) * tile_e)
                 + 12 * b_pad * (tile_n + tile_e)
                 + (2 << 20))
    vmem_limit = int(min(max(int(vmem_need * 1.5), 32 << 20), 100 << 20))

    cost = pl.CostEstimate(
        flops=2 * B * (N_pad * Fx + E_pad * Fe) + 2 * B * (Fx + Fe + Fu) * out_dim,
        transcendentals=0,
        bytes_accessed=4 * ((Fx + 1) * N_pad + (Fe + 1) * E_pad
                            + num_cores * B * (Fx + Fe)
                            + B * Fu + (Fx + Fe + Fu + 1) * out_dim + B * out_dim),
    )

    kernel = functools.partial(_scatter_sum_kernel,
                               n_node_chunks=n_node_chunks,
                               n_edge_chunks=n_edge_chunks,
                               chunks_per_core=chunks_per_core)

    node_part, edge_part = pl.pallas_call(
        kernel,
        out_shape=(jax.ShapeDtypeStruct((num_cores, B, Fx), jnp.float32),
                   jax.ShapeDtypeStruct((num_cores, B, Fe), jnp.float32)),
        grid_spec=pltpu.PrefetchScalarGridSpec(
            num_scalar_prefetch=0,
            grid=(num_cores, chunks_per_core),
            in_specs=[
                pl.BlockSpec((Fx, tile_n), node_map),   # node features (streamed, lane-dense)
                pl.BlockSpec((1, tile_n), node_map),    # node graph ids (streamed)
                pl.BlockSpec((Fe, tile_e), edge_map),   # edge features (streamed, lane-dense)
                pl.BlockSpec((1, tile_e), edge_map),    # edge graph ids (streamed)
            ],
            out_specs=[
                pl.BlockSpec((None, B, Fx), lambda c, i: (c, 0, 0)),  # per-core node partial
                pl.BlockSpec((None, B, Fe), lambda c, i: (c, 0, 0)),  # per-core edge partial
            ],
            scratch_shapes=[
                pltpu.VMEM((B, tile_n), jnp.int32),     # hoisted iota rows (nodes)
                pltpu.VMEM((B, tile_e), jnp.int32),     # hoisted iota rows (edges)
            ],
        ),
        compiler_params=pltpu.CompilerParams(
            dimension_semantics=("parallel", "arbitrary"),
            vmem_limit_bytes=vmem_limit),
        cost_estimate=cost,
    )(x_t, nb, e_t, eb)

    # Tiny nonlinear epilogue (cannot be done per-core): combine partials,
    # concat-equivalent split-W Linear, bias, ReLU.
    w1 = W[:Fx, :]
    w2 = W[Fx:Fx + Fe, :]
    w3 = W[Fx + Fe:, :]
    b2 = b.reshape(1, out_dim)

    return pl.pallas_call(
        _epilogue_kernel,
        out_shape=jax.ShapeDtypeStruct((B, out_dim), jnp.float32),
    )(node_part, edge_part, u, w1, w2, w3, b2)


def _reference(x, edge_index, edge_attr, u, batch, W, b):
    B = u.shape[0]
    node_sum = jax.ops.segment_sum(x, batch, num_segments=B)
    edge_sum = jax.ops.segment_sum(edge_attr, batch[edge_index[1]], num_segments=B)
    feats = jnp.concatenate([node_sum, edge_sum, u], axis=-1)
    return jnp.maximum(feats @ W + b, 0.0)


if __name__ == "__main__":
    key = jax.random.PRNGKey(0)
    kx, ke, ku, kw, kb, kbatch, kei = jax.random.split(key, 7)

    # Small synthetic graph batch.
    N, E, B = 300, 500, 3            # nodes, edges, graphs
    Fx, Fe, Fu = 8, 6, 4             # node / edge / global feature dims
    in_dim = Fx + Fe + Fu            # 18
    out_dim = 16

    x = jax.random.normal(kx, (N, Fx), dtype=jnp.float32)
    edge_attr = jax.random.normal(ke, (E, Fe), dtype=jnp.float32)
    u = jax.random.normal(ku, (B, Fu), dtype=jnp.float32)
    batch = jnp.sort(jax.random.randint(kbatch, (N,), 0, B)).astype(jnp.int32)
    edge_index = jax.random.randint(kei, (2, E), 0, N).astype(jnp.int32)

    # Deterministic Linear params (nn.Linear(in_dim, out_dim)).
    W = (jax.random.uniform(kw, (in_dim, out_dim), dtype=jnp.float32) - 0.5) * 0.2
    b = (jax.random.uniform(kb, (out_dim,), dtype=jnp.float32) - 0.5) * 0.2

    ref = _reference(x, edge_index, edge_attr, u, batch, W, b)

    # 1) Small explicit tiles: exercises multi-step streaming, mismatched node/
    #    edge chunk counts (3 vs 4), clamped/gated index maps, and the 2-core
    #    grid split + per-core partial combine.
    out_small = global_model_forward(x, edge_index, edge_attr, u, batch, W, b,
                                     tile_n=128, tile_e=128)
    out_small = jax.block_until_ready(out_small)
    assert out_small.shape == (B, out_dim)
    assert jnp.allclose(out_small, ref, atol=1e-4, rtol=1e-4), \
        float(jnp.max(jnp.abs(out_small - ref)))

    # 2) Auto-sized (production) tiles.
    out_auto = global_model_forward(x, edge_index, edge_attr, u, batch, W, b)
    out_auto = jax.block_until_ready(out_auto)
    assert jnp.allclose(out_auto, ref, atol=1e-4, rtol=1e-4), \
        float(jnp.max(jnp.abs(out_auto - ref)))

    print("KERNEL_OK")
</pallas_src>

<mosaic_0001>
module attributes {stable_mosaic.version = 11 : i64} {
  func.func @_scatter_sum_kernel(%arg0: i32, %arg1: i32, %arg2: memref<8x128xf32, #tpu.memory_space<vmem>>, %arg3: memref<1x128xi32, #tpu.memory_space<vmem>>, %arg4: memref<6x128xf32, #tpu.memory_space<vmem>>, %arg5: memref<1x128xi32, #tpu.memory_space<vmem>>, %arg6: memref<1x3x8xf32, #tpu.memory_space<vmem>>, %arg7: memref<1x3x6xf32, #tpu.memory_space<vmem>>, %arg8: memref<3x128xi32, #tpu.memory_space<vmem>>, %arg9: memref<3x128xi32, #tpu.memory_space<vmem>>) attributes {dimension_semantics = [#tpu.dimension_semantics<parallel>, #tpu.dimension_semantics<arbitrary>], iteration_bounds = array<i64: 2, 2>, scalar_prefetch = 0 : i64, scratch_operands = 2 : i64, tpu.core_type = #tpu.core_type<tc>, window_params = [{transform_indices = @transform_0, window_bounds = array<i64: 8, 128>}, {transform_indices = @transform_1, window_bounds = array<i64: 1, 128>}, {transform_indices = @transform_2, window_bounds = array<i64: 6, 128>}, {transform_indices = @transform_3, window_bounds = array<i64: 1, 128>}, {transform_indices = @transform_4, window_bounds = array<i64: 1, 3, 8>}, {transform_indices = @transform_5, window_bounds = array<i64: 1, 3, 6>}]} {
    %c2_i32 = arith.constant 2 : i32
    %0 = arith.muli %arg0, %c2_i32 : i32
    %1 = arith.addi %0, %arg1 : i32
    %c0_i32 = arith.constant 0 : i32
    %2 = arith.cmpi eq, %arg1, %c0_i32 : i32
    %3 = arith.extui %2 : i1 to i32
    %c0_i32_0 = arith.constant 0 : i32
    %4 = arith.cmpi ne, %3, %c0_i32_0 : i32
    scf.if %4 {
      %cst = arith.constant 0.000000e+00 : f32
      %11 = vector.broadcast %cst : f32 to vector<3x8xf32>
      %c0 = arith.constant 0 : index
      %c0_3 = arith.constant 0 : index
      %c0_4 = arith.constant 0 : index
      %12 = vector.load %arg6[%c0, %c0_3, %c0_4] : memref<1x3x8xf32, #tpu.memory_space<vmem>>, vector<1x3x8xf32>
      %13 = vector.shape_cast %12 : vector<1x3x8xf32> to vector<3x8xf32>
      %14 = vector.shape_cast %11 : vector<3x8xf32> to vector<1x3x8xf32>
      tpu.vector_store %arg6[%c0, %c0_3, %c0_4], %14 {strides = array<i32>} : memref<1x3x8xf32, #tpu.memory_space<vmem>>, vector<1x3x8xf32>,
      %cst_5 = arith.constant 0.000000e+00 : f32
      %15 = vector.broadcast %cst_5 : f32 to vector<3x6xf32>
      %c0_6 = arith.constant 0 : index
      %c0_7 = arith.constant 0 : index
      %c0_8 = arith.constant 0 : index
      %16 = vector.load %arg7[%c0_6, %c0_7, %c0_8] : memref<1x3x6xf32, #tpu.memory_space<vmem>>, vector<1x3x6xf32>
      %17 = vector.shape_cast %16 : vector<1x3x6xf32> to vector<3x6xf32>
      %18 = vector.shape_cast %15 : vector<3x6xf32> to vector<1x3x6xf32>
      tpu.vector_store %arg7[%c0_6, %c0_7, %c0_8], %18 {strides = array<i32>} : memref<1x3x6xf32, #tpu.memory_space<vmem>>, vector<1x3x6xf32>,
      %19 = tpu.iota {dimensions = array<i32: 0>} : vector<3x128xi32>
      %c0_9 = arith.constant 0 : index
      %c0_10 = arith.constant 0 : index
      %20 = vector.load %arg8[%c0_9, %c0_10] : memref<3x128xi32, #tpu.memory_space<vmem>>, vector<3x128xi32>
      tpu.vector_store %arg8[%c0_9, %c0_10], %19 {strides = array<i32>} : memref<3x128xi32, #tpu.memory_space<vmem>>, vector<3x128xi32>,
      %21 = tpu.iota {dimensions = array<i32: 0>} : vector<3x128xi32>
      %c0_11 = arith.constant 0 : index
      %c0_12 = arith.constant 0 : index
      %22 = vector.load %arg9[%c0_11, %c0_12] : memref<3x128xi32, #tpu.memory_space<vmem>>, vector<3x128xi32>
      tpu.vector_store %arg9[%c0_11, %c0_12], %21 {strides = array<i32>} : memref<3x128xi32, #tpu.memory_space<vmem>>, vector<3x128xi32>,
    } else {
    }
    %c3_i32 = arith.constant 3 : i32
    %5 = arith.cmpi slt, %1, %c3_i32 : i32
    %6 = arith.extui %5 : i1 to i32
    %c0_i32_1 = arith.constant 0 : i32
    %7 = arith.cmpi ne, %6, %c0_i32_1 : i32
    scf.if %7 {
      %c0 = arith.constant 0 : index
      %c0_3 = arith.constant 0 : index
      %11 = vector.load %arg3[%c0, %c0_3] : memref<1x128xi32, #tpu.memory_space<vmem>>, vector<1x128xi32>
      %c0_4 = arith.constant 0 : index
      %c0_5 = arith.constant 0 : index
      %12 = vector.load %arg8[%c0_4, %c0_5] : memref<3x128xi32, #tpu.memory_space<vmem>>, vector<3x128xi32>
      %13 = vector.broadcast %11 : vector<1x128xi32> to vector<3x128xi32>
      %14 = arith.cmpi eq, %13, %12 : vector<3x128xi32>
      %15 = arith.extui %14 : vector<3x128xi1> to vector<3x128xi32>
      %16 = arith.sitofp %15 : vector<3x128xi32> to vector<3x128xf32>
      %c0_6 = arith.constant 0 : index
      %c0_7 = arith.constant 0 : index
      %c0_8 = arith.constant 0 : index
      %17 = vector.load %arg6[%c0_6, %c0_7, %c0_8] : memref<1x3x8xf32, #tpu.memory_space<vmem>>, vector<1x3x8xf32>
      %18 = vector.shape_cast %17 : vector<1x3x8xf32> to vector<3x8xf32>
      %c0_9 = arith.constant 0 : index
      %c0_10 = arith.constant 0 : index
      %19 = vector.load %arg2[%c0_9, %c0_10] : memref<8x128xf32, #tpu.memory_space<vmem>>, vector<8x128xf32>
      %cst = arith.constant dense<0.000000e+00> : vector<3x8xf32>
      %20 = tpu.matmul %16, %19, %cst {dimension_numbers = #tpu.dot_dimension_numbers<[1], [1], [0], [0], [0, 0, 1, 0], [], []>} : vector<3x128xf32>, vector<8x128xf32>, vector<3x8xf32> -> vector<3x8xf32>
      %21 = arith.addf %18, %20 : vector<3x8xf32>
      %c0_11 = arith.constant 0 : index
      %c0_12 = arith.constant 0 : index
      %c0_13 = arith.constant 0 : index
      %22 = vector.load %arg6[%c0_11, %c0_12, %c0_13] : memref<1x3x8xf32, #tpu.memory_space<vmem>>, vector<1x3x8xf32>
      %23 = vector.shape_cast %22 : vector<1x3x8xf32> to vector<3x8xf32>
      %24 = vector.shape_cast %21 : vector<3x8xf32> to vector<1x3x8xf32>
      tpu.vector_store %arg6[%c0_11, %c0_12, %c0_13], %24 {strides = array<i32>} : memref<1x3x8xf32, #tpu.memory_space<vmem>>, vector<1x3x8xf32>,
    } else {
    }
    %c4_i32 = arith.constant 4 : i32
    %8 = arith.cmpi slt, %1, %c4_i32 : i32
    %9 = arith.extui %8 : i1 to i32
    %c0_i32_2 = arith.constant 0 : i32
    %10 = arith.cmpi ne, %9, %c0_i32_2 : i32
    scf.if %10 {
      %c0 = arith.constant 0 : index
      %c0_3 = arith.constant 0 : index
      %11 = vector.load %arg5[%c0, %c0_3] : memref<1x128xi32, #tpu.memory_space<vmem>>, vector<1x128xi32>
      %c0_4 = arith.constant 0 : index
      %c0_5 = arith.constant 0 : index
      %12 = vector.load %arg9[%c0_4, %c0_5] : memref<3x128xi32, #tpu.memory_space<vmem>>, vector<3x128xi32>
      %13 = vector.broadcast %11 : vector<1x128xi32> to vector<3x128xi32>
      %14 = arith.cmpi eq, %13, %12 : vector<3x128xi32>
      %15 = arith.extui %14 : vector<3x128xi1> to vector<3x128xi32>
      %16 = arith.sitofp %15 : vector<3x128xi32> to vector<3x128xf32>
      %c0_6 = arith.constant 0 : index
      %c0_7 = arith.constant 0 : index
      %c0_8 = arith.constant 0 : index
      %17 = vector.load %arg7[%c0_6, %c0_7, %c0_8] : memref<1x3x6xf32, #tpu.memory_space<vmem>>, vector<1x3x6xf32>
      %18 = vector.shape_cast %17 : vector<1x3x6xf32> to vector<3x6xf32>
      %c0_9 = arith.constant 0 : index
      %c0_10 = arith.constant 0 : index
      %19 = vector.load %arg4[%c0_9, %c0_10] : memref<6x128xf32, #tpu.memory_space<vmem>>, vector<6x128xf32>
      %cst = arith.constant dense<0.000000e+00> : vector<3x6xf32>
      %20 = tpu.matmul %16, %19, %cst {dimension_numbers = #tpu.dot_dimension_numbers<[1], [1], [0], [0], [0, 0, 1, 0], [], []>} : vector<3x128xf32>, vector<6x128xf32>, vector<3x6xf32> -> vector<3x6xf32>
      %21 = arith.addf %18, %20 : vector<3x6xf32>
      %c0_11 = arith.constant 0 : index
      %c0_12 = arith.constant 0 : index
      %c0_13 = arith.constant 0 : index
      %22 = vector.load %arg7[%c0_11, %c0_12, %c0_13] : memref<1x3x6xf32, #tpu.memory_space<vmem>>, vector<1x3x6xf32>
      %23 = vector.shape_cast %22 : vector<1x3x6xf32> to vector<3x6xf32>
      %24 = vector.shape_cast %21 : vector<3x6xf32> to vector<1x3x6xf32>
      tpu.vector_store %arg7[%c0_11, %c0_12, %c0_13], %24 {strides = array<i32>} : memref<1x3x6xf32, #tpu.memory_space<vmem>>, vector<1x3x6xf32>,
    } else {
    }
    return
  }
  func.func @transform_0(%arg0: i32, %arg1: i32) -> (i32, i32) {
    %c2_i32 = arith.constant 2 : i32
    %0 = arith.muli %arg0, %c2_i32 : i32
    %1 = arith.addi %0, %arg1 : i32
    %c2_i32_0 = arith.constant 2 : i32
    %2 = arith.minsi %1, %c2_i32_0 : i32
    %c0_i32 = arith.constant 0 : i32
    %c0_i32_1 = arith.constant 0 : i32
    return %c0_i32, %2 : i32, i32
  }
  func.func @transform_1(%arg0: i32, %arg1: i32) -> (i32, i32) {
    %c2_i32 = arith.constant 2 : i32
    %0 = arith.muli %arg0, %c2_i32 : i32
    %1 = arith.addi %0, %arg1 : i32
    %c2_i32_0 = arith.constant 2 : i32
    %2 = arith.minsi %1, %c2_i32_0 : i32
    %c0_i32 = arith.constant 0 : i32
    %c0_i32_1 = arith.constant 0 : i32
    return %c0_i32, %2 : i32, i32
  }
  func.func @transform_2(%arg0: i32, %arg1: i32) -> (i32, i32) {
    %c2_i32 = arith.constant 2 : i32
    %0 = arith.muli %arg0, %c2_i32 : i32
    %1 = arith.addi %0, %arg1 : i32
    %c3_i32 = arith.constant 3 : i32
    %2 = arith.minsi %1, %c3_i32 : i32
    %c0_i32 = arith.constant 0 : i32
    %c0_i32_0 = arith.constant 0 : i32
    return %c0_i32, %2 : i32, i32
  }
  func.func @transform_3(%arg0: i32, %arg1: i32) -> (i32, i32) {
    %c2_i32 = arith.constant 2 : i32
    %0 = arith.muli %arg0, %c2_i32 : i32
    %1 = arith.addi %0, %arg1 : i32
    %c3_i32 = arith.constant 3 : i32
    %2 = arith.minsi %1, %c3_i32 : i32
    %c0_i32 = arith.constant 0 : i32
    %c0_i32_0 = arith.constant 0 : i32
    return %c0_i32, %2 : i32, i32
  }
  func.func @transform_4(%arg0: i32, %arg1: i32) -> (i32, i32, i32) {
    %c0_i32 = arith.constant 0 : i32
    %c0_i32_0 = arith.constant 0 : i32
    %c0_i32_1 = arith.constant 0 : i32
    return %arg0, %c0_i32, %c0_i32_0 : i32, i32, i32
  }
  func.func @transform_5(%arg0: i32, %arg1: i32) -> (i32, i32, i32) {
    %c0_i32 = arith.constant 0 : i32
    %c0_i32_0 = arith.constant 0 : i32
    %c0_i32_1 = arith.constant 0 : i32
    return %arg0, %c0_i32, %c0_i32_0 : i32, i32, i32
  }
}

</mosaic_0001>

<bundles_post_ra>
// kernel: tpu_custom_call.1
= control target key start
LH: loop header
LB: loop body
LE: loop exit
PB: predicated region body
PF: predicated region fallthrough
CT: control target
= control target key end

     0   :  { %s1355_s0 = inlined_call_operand.hbm [shape: f32[8,384], index: 0, kind: input, shape index: {}]   ;;  %s1356_s1 = inlined_call_operand.hbm [shape: s32[1,384], index: 1, kind: input, shape index: {}]   ;;  %s1357_s2 = inlined_call_operand.hbm [shape: f32[6,512], index: 2, kind: input, shape index: {}]   ;;  %s1358_s3 = inlined_call_operand.hbm [shape: s32[1,512], index: 3, kind: input, shape index: {}]   ;;  %s1359_s4 = inlined_call_operand.vmem [shape: f32[2,3,8], index: 4, kind: output, shape index: {0}]   ;;  %s1360_s5 = inlined_call_operand.vmem [shape: f32[2,3,6], index: 5, kind: output, shape index: {1}]  }
   0x1   :  { %1368 = sst [smem:[#allocation22_spill]] %s1355_s0 }
   0x2   :  { %1369 = sst [smem:[#allocation23_spill]] %s1356_s1 }
   0x3   :  { %1370 = sst [smem:[#allocation24_spill]] %s1359_s4 }
   0x4   :  { %1371 = sst [smem:[#allocation25_spill]] %s1360_s5 }
   0x5   :  { %11 = vsyncpa [#allocation5], 0 }
   0x6   :  { %13 = vsyncpa [#allocation5 + $0x1], 0 }
   0x7   :  { %14 = vsyncpa [#allocation7], 0 }
   0x8   :  { %16 = vsyncpa [#allocation7 + $0x1], 0 }
   0x9   :  { %17 = vsyncpa [#allocation10], 0 }
   0xa   :  { %19 = vsyncpa [#allocation10 + $0x1], 0  ;;  %s1091_s18 = smov 0   ;;  %s1093_s19 = smov 0  }
   0xb   :  { %s1095_s20 = smov 0   ;;  %s1097_s21 = smov 0  }
   0xc   :  { %s1099_s22 = smov 0   ;;  %s1101_s23 = smov 0  }
   0xd   :  { %s1103_s24 = smov 0   ;;  %s1105_s25 = smov 0  }
   0xe   :  { %s1107_s26 = smov 0   ;;  %s1109_s27 = smov 0  }
   0xf   :  { %s1111_s28 = smov 0  }
  0x10 LB: > { %1372 = sst [smem:[#allocation15_spill]] %s1036_s23  ;;  %s1361_s29 = sadd.s32 4294967295, %s1056_s28   ;;  %s1056_s28 = sphi %s1111_s28, %s25_s28   ;;  %s1052_s27 = sphi %s1109_s27, %s1398_s27   ;;  %s1048_s26 = sphi %s1107_s26, %s1397_s26   ;;  %s1044_s25 = sphi %s1105_s25, %s1404_s25   ;;  %s1040_s24 = sphi %s1103_s24, %s1395_s24   ;;  %s1036_s23 = sphi %s1101_s23, %s1394_s23   ;;  %s1032_s22 = sphi %s1099_s22, %s1403_s22   ;;  %s1028_s21 = sphi %s1097_s21, %s1402_s21   ;;  %s1024_s20 = sphi %s1095_s20, %s1401_s20   ;;  %s1020_s19 = sphi %s1093_s19, %s1400_s19   ;;  %s1016_s18 = sphi %s1091_s18, %s1399_s18  }
  0x11   : > { %1373 = sst [smem:[#allocation16_spill]] %s1040_s24  ;;  %s34_s30 = sadd.s32 1, %s1048_s26 }
  0x12   : > { %1374 = sst [smem:[#allocation17_spill]] %s1048_s26  ;;  %p35_p0 = scmp.ge.s32.totalorder %s34_s30, 2 }
  0x13   : > { %1375 = sst [smem:[#allocation18_spill]] %s1052_s27  ;;  %s37_s6 = sadd.s32 1, %s1052_s27 }
  0x14   : > { %s686_s7 = sshll.u32 %s1052_s27, 1  ;;  %s52_s8 = sadd.s32 1, %s1036_s23 }
  0x15   : > { %s1406_s30 = smov (%p35_p0, %s34_s30), 0  ;;  %s1408_s6 = smov (!%p35_p0, %s37_s6), %s1052_s27 }
  0x16   : > { %1376 = sst [smem:[#allocation19_spill]] %s1406_s30  ;;  %s1155_s9 = sadd.s32 %s1048_s26, %s686_s7 }
  0x17   : > { %p59_p1 = scmp.ne.s32.totalorder %s1036_s23, %s1032_s22  ;;  %p39_p2 = scmp.ge.s32.totalorder %s1408_s6, 2 }
  0x18   : > { %p43_p3 = scmp.lt.s32.totalorder %s1155_s9, 2  ;;  %p60_p4 = scmp.eq.s32.totalorder %s1056_s28, 0 }
  0x19   : > { %p65_p5 = scmp.ne.s32.totalorder %s1032_s22, %s1028_s21  ;;  %s1410_s6 = smov (%p39_p2, %s1408_s6), 0 }
  0x1a   : > { %1377 = sst [smem:[#allocation20_spill]] %s1410_s6  ;;  %s687_s11 = sshll.u32 %s1410_s6, 1 }
  0x1b   : > { %s1166_s10 = scalar_select %p43_p3, %s1155_s9, 2 }
  0x1c   : > { %p1171_p6 = por %p60_p4, %p59_p1  ;;  %s1176_s13 = sadd.s32 %s687_s11, %s1406_s30 }
  0x1d   : > { %p66_p7 = scmp.eq.s32.totalorder %s1361_s29, 0  ;;  %p47_p8 = scmp.lt.s32.totalorder %s1176_s13, 2 }
  0x1e   : > { %p127_p9 = scmp.ne.s32.totalorder %s1024_s20, %s1020_s19  ;;  %p133_p11 = scmp.ne.s32.totalorder %s1020_s19, %s1016_s18 }
  0x1f   : > { %p1183_p10 = por %p66_p7, %p65_p5  ;;  %p740_p1 = scmp.lt.s32.totalorder %s1056_s28, 4 }
  0x20   : > { %s48_s15 = scalar_select %p47_p8, %s1176_s13, 2 }
  0x21   : > { %p1192_p12 = por %p127_p9, %p60_p4  ;;  %p1196_p13 = por %p133_p11, %p66_p7 }
  0x22   : > { %s49_s21 = ssub.s32 %s1166_s10, %s48_s15  ;;  %s243_s7 = sand.u32 1, %s1036_s23  }
  0x23   : > { %p50_p0 = scmp.eq.s32.totalorder %s49_s21, 0  ;;  %s266_s11 = sand.u32 1, %s1056_s28  }
  0x24   : > { %p1209_p2 = pnand %p740_p1, %p1171_p6  ;;  %s1384_s1 = sld [smem:[#allocation23_spill]] }
  0x25   : > { %s1205_s18 = scalar_select %p50_p0, %s1036_s23, %s52_s8  }
  0x26   : > { %s269_s21 = scalar_lea.vmem [#allocation6], %s243_s7  ;;  %p1219_p3 = pnand %p740_p1, %p1192_p12 }
  0x27   : > { %1382 = sst [smem:[#allocation21_spill]] %s1205_s18  ;;  %s280_s26 = sshll.u32 %s269_s21, 4  ;;  %s281_s26 = int_to_ptr.vmem [resolvable:$true] %s280_s26 }
  0x28   : > { %s1223_s12 = scalar_lea.sflag [#allocation7], %s266_s11  ;;  %p704_p4 = scmp.ge.s32.totalorder %s1056_s28, 1 }
  0x29   : > { %p329_p5 = scmp.lt.s32.totalorder %s1056_s28, 5  ;;  %s696_s30 = sshll.u32 %s243_s7, 3 }
  0x2a   : > { %s276_s27 = scalar_lea.hbm %s1384_s1, %s1166_s10  ;;  %s698_s6 = sshll.u32 %s1166_s10, 3 }
  0x2b   : > { %s278_s15 = sshll.u32 %s276_s27, 4  ;;  %p1230_p6 = pnand %p704_p4, %p329_p5  ;;  %s279_s15 = int_to_ptr.hbm [resolvable:$true] %s278_s15 }
  0x2c   : > { %733 = dma.hbm_to_vmem [thread:$0]  (!%p1209_p2), %s279_s15, 16, %s281_s26, %s1223_s12  }
  0x2d   : > { %s1387_s0 = sld [smem:[#allocation22_spill]]  ;;  %s247_s1 = scalar_lea.vmem [#allocation4], %s696_s30 }
  0x2e   : > { %s259_s18 = sshll.u32 %s247_s1, 4  ;;  %p111_p7 = scmp.lt.s32.totalorder %s1155_s9, 3  ;;  %s260_s18 = int_to_ptr.vmem [resolvable:$true] %s259_s18 }
  0x2f   : > { %s244_s26 = scalar_lea.sflag [#allocation5], %s243_s7  ;;  %p115_p8 = scmp.lt.s32.totalorder %s1176_s13, 3 }
  0x30   : > { %s1412_s9 = smov (!%p111_p7, %s1155_s9), 3  ;;  %s120_s15 = sadd.s32 1, %s1024_s20 }
  0x31   : > { %s289_s10 = sand.u32 1, %s1024_s20   ;;  %s702_s5 = sshll.u32 %s1412_s9, 3 }
  0x32   : > { %s1414_s13 = smov (!%p115_p8, %s1176_s13), 3  ;;  %s700_s16 = sshll.u32 %s289_s10, 3 }
  0x33   : > { %s255_s11 = scalar_lea.hbm %s1387_s0, %s698_s6  ;;  %s299_s1 = scalar_lea.hbm %s1357_s2, %s702_s5 }
  0x34   : > { %s257_s23 = sshll.u32 %s255_s11, 4  ;;  %s117_s21 = ssub.s32 %s1412_s9, %s1414_s13  ;;  %s258_s23 = int_to_ptr.hbm [resolvable:$true] %s257_s23 }
  0x35   : > { %730 = dma.hbm_to_vmem [thread:$0]  (!%p1209_p2), %s258_s23, 128, %s260_s18, %s244_s26  }
  0x36   : > { %p118_p9 = scmp.eq.s32.totalorder %s117_s21, 0  ;;  %s301_s7 = sshll.u32 %s299_s1, 4  ;;  %s302_s7 = int_to_ptr.hbm [resolvable:$true] %s301_s7 }
  0x37   : > { %s291_s29 = scalar_lea.vmem [#allocation8], %s700_s16  ;;  %s320_s0 = scalar_lea.hbm %s1358_s3, %s1412_s9 }
  0x38   : > { %s303_s23 = sshll.u32 %s291_s29, 4  ;;  %s322_s4 = sshll.u32 %s320_s0, 4  ;;  %s304_s23 = int_to_ptr.vmem [resolvable:$true] %s303_s23  ;;  %s323_s4 = int_to_ptr.hbm [resolvable:$true] %s322_s4 }
  0x39   : > { %s1250_s18 = scalar_select %p118_p9, %s1024_s20, %s120_s15  }
  0x3a   : > { %736 = dma.hbm_to_vmem [thread:$0]  (!%p1219_p3), %s302_s7, 128, %s304_s23, %s1223_s12  }
  0x3b   : > { %s313_s24 = scalar_lea.vmem [#allocation9], %s289_s10  ;;  %s311_s5 = scalar_lea.sflag [#allocation10], %s289_s10 }
  0x3c   : > { %s324_s6 = sshll.u32 %s313_s24, 4  ;;  %333 = sbr.rel (%p1230_p6) target bundleno = 375 (0x177), region = 36  ;;  %s325_s6 = int_to_ptr.vmem [resolvable:$true] %s324_s6 }
  0x3d   : > { %739 = dma.hbm_to_vmem [thread:$0]  (!%p1219_p3), %s323_s4, 16, %s325_s6, %s311_s5  }
  0x3e   : > { %s1263_s13 = sand.u32 (!%p1230_p6), 1, %s1032_s22  }
  0x3f   : > { %s705_s12 = sshll.u32 (!%p1230_p6), %s1263_s13, 3  ;;  %s336_s15 = scalar_lea.sflag (!%p1230_p6), [#allocation5], %s1263_s13 }
  0x40   : > { %s1267_s9 = scalar_lea.vmem (!%p1230_p6), [#allocation4], %s705_s12 }
  0x41   : > { %999 = dma.done.wait (%p1183_p10), %s336_s15, 128  }
  0x42   : > { %1001 = vsyncadd (%p1183_p10), %s336_s15, 4294967168  ;;  %s1388_s0 = sadd.s32 4294967295, %s1056_s28   ;;  %s348_s8 = scalar_lea.vmem [#allocation6], %s1263_s13 }
  0x43   : > { %s345_s4 = sand.u32 1, %s1388_s0  }
  0x44   : > { %s346_s24 = scalar_lea.sflag [#allocation7], %s345_s4 }
  0x45   : > { %1003 = dma.done.wait (%p1183_p10), %s346_s24, 16  }
  0x46   : > { %1005 = vsyncadd (%p1183_p10), %s346_s24, 4294967280  ;;  %s1281_s27 = sand.u32 1, %s1020_s19  }
  0x47   : > { %s706_s10 = sshll.u32 %s1281_s27, 3 }
  0x48   : > { %s1284_s16 = scalar_lea.vmem [#allocation8], %s706_s10 }
  0x49   : > { %1007 = dma.done.wait (%p1196_p13), %s346_s24, 128  }
  0x4a   : > { %1009 = vsyncadd (%p1196_p13), %s346_s24, 4294967168  ;;  %s365_s30 = scalar_lea.sflag [#allocation10], %s1281_s27  ;;  %s367_s1 = scalar_lea.vmem [#allocation9], %s1281_s27 }
  0x4b   : > { %1011 = dma.done.wait (%p1196_p13), %s365_s30, 16  }
  0x4c   : > { %1013 = vsyncadd (%p1196_p13), %s365_s30, 4294967280  ;;  %s1389_s14 = sld [smem:[#allocation16_spill]]  ;;  %p427_p10 = scmp.lt.s32.totalorder %s1044_s25, 1 }
  0x4d   : > { %s709_s21 = sshll.u32 %s1044_s25, 1  ;;  %s1390_s26 = sld [smem:[#allocation24_spill]] }
  0x4e   : > { %s1416_s25 = smov (!%p427_p10, %s1044_s25), 1  ;;  %s1391_s15 = sld [smem:[#allocation25_spill]] }
  0x4f   : > { %s707_s29 = sshll.u32 %s1416_s25, 2 }
  0x52   : > { %s1299_s7 = sadd.s32 %s1389_s14, %s709_s21  ;;  %p710_p11 = scmp.ne.s32.totalorder %s1389_s14, 0 }
  0x53   : > { %s430_s6 = scalar_lea.vmem %s1390_s26, %s707_s29 }
  0x54   : > { %s1308_s0 = scalar_lea.vmem %s1391_s15, %s707_s29  ;;  %440 = sbr.rel (%p710_p11) target bundleno = 95 (0x5f), region = 56 }
  0x59   : > { %vm441_vm0 = vcmask 59392   ;;  %vm443_vm1 = vcmask 43008   ;;  %v445_v0 = vlaneseq  ;;  %v1058_v1 = vmov 0.0  }
  0x5a   : > { %442 = vst.msk [vmem:[%s430_s6] sm:$0x7] %vm441_vm0, %v1058_v1 }
  0x5b   : > { %444 = vst.msk [vmem:[%s1308_s0] sm:$0x7] %vm443_vm1, %v1058_v1  ;;  %v446_v2 = vshrl.u32 %v445_v0, 7 }
  0x5d   : > { %447 = vst [vmem:[#allocation2] sm:$0x7] %v446_v2 }
  0x5e   : > { %448 = vst [vmem:[#allocation3] sm:$0x7] %v446_v2 }
  0x5f PF: > { %p711_p12 = scmp.ge.s32.totalorder %s1299_s7, 3 }
  0x61   : > { %452 = sbr.rel (%p711_p12) target bundleno = 235 (0xeb), region = 60 }
  0x66   : > { %v460_v3 = vld [vmem:[%s1267_s9] sm:$0xff]  ;;  %v454_v4 = vld [vmem:[#allocation2] sm:$0x7]  ;;  %v1059_v6 = vmov 1.0   ;;  %vm482_vm3 = vcmask 59392  }
  0x67   : > { %476 = vmatpush.xpose.msra.mxu0 %v460_v3  ;;  %v832_v5 = vld [vmem:[%s348_s8] ss:$0 sm:$0xff] }
  0x68   : > { %vm456_vm2 = vcmp.eq.s32.totalorder %v832_v5, %v454_v4  ;;  %v459_v7 = vld [vmem:[%s430_s6] sm:$0x7] }
  0x6a   : > { %713 = vmatmul.msk.f32.vlgmr.msra.gmra.mxu0 %vm456_vm2, %v1059_v6 }
  0xe7   : > { %v478_v8 = vpop.f32.mrf.mxu0 }
  0xe8   : > { %v481_v9 = vadd.f32 %v478_v8, %v459_v7 }
  0xea   : > { %483 = vst.msk [vmem:[%s430_s6] sm:$0x7] %vm482_vm3, %v481_v9 }
  0xeb PF: > { %p714_p13 = scmp.ge.s32.totalorder %s1299_s7, 4 }
  0xed   : > { %487 = sbr.rel (%p714_p13) target bundleno = 375 (0x177), region = 64 }
  0xf2   : > { %v495_v10 = vld [vmem:[%s1284_s16] sm:$0x3f]  ;;  %v833_v12 = vld [vmem:[%s367_s1] ss:$0 sm:$0xff]  ;;  %v1060_v13 = vmov 1.0   ;;  %vm517_vm5 = vcmask 43008  }
  0xf3   : > { %v489_v11 = vld [vmem:[#allocation3] sm:$0x7]  ;;  %511 = vmatpush.xpose.msra.mxu0 %v495_v10  ;;  %v494_v14 = vld [vmem:[%s1308_s0] sm:$0x7] }
  0xf4   : > { %vm491_vm4 = vcmp.eq.s32.totalorder %v833_v12, %v489_v11 }
  0xf6   : > { %716 = vmatmul.msk.f32.vlgmr.msra.gmra.mxu0 %vm491_vm4, %v1060_v13 }
 0x173   : > { %v513_v15 = vpop.f32.mrf.mxu0 }
 0x174   : > { %v516_v16 = vadd.f32 %v513_v15, %v494_v14 }
 0x176   : > { %518 = vst.msk [vmem:[%s1308_s0] sm:$0x7] %vm517_vm5, %v516_v16 }
 0x177 PF: > { %s25_s28 = sadd.s32 1, %s1056_s28   ;;  %s1392_s25 = smov %s1250_s18 }
 0x178   : > { %p22_p0 = scmp.ge.s32.totalorder %s25_s28, 6   ;;  %s1393_s17 = sld [smem:[#allocation15_spill]] }
 0x179   : > { %s1394_s23 = sld [smem:[#allocation21_spill]]  ;;  %s1399_s18 = smov %s1020_s19 }
 0x17a   : > { %s1395_s24 = sld [smem:[#allocation17_spill]]  ;;  %s1400_s19 = smov %s1024_s20 }
 0x17b   : > { %s1396_s13 = sld [smem:[#allocation18_spill]]  ;;  %s1401_s20 = smov %s1392_s25 }
 0x17c   : > { %s1397_s26 = sld [smem:[#allocation19_spill]]  ;;  %s1402_s21 = smov %s1032_s22 }
 0x17d   : > { %s1398_s27 = sld [smem:[#allocation20_spill]]  ;;  %24 = sbr.rel (!%p22_p0) target bundleno = 16 (0x10), region = 137 }
 0x17e   : > { %s1403_s22 = smov %s1393_s17 }
 0x181   : > { %s1404_s25 = smov %s1396_s13 }
 0x182   :  { %552 = vsyncpa [#allocation5], 1 }
 0x183   :  { %554 = vsyncpa [#allocation5 + $0x1], 1 }
 0x184   :  { %555 = vsyncpa [#allocation7], 1 }
 0x185   :  { %557 = vsyncpa [#allocation7 + $0x1], 1 }
 0x186   :  { %558 = vsyncpa [#allocation10], 1 }
 0x187   :  { %560 = vsyncpa [#allocation10 + $0x1], 1 }

</bundles_post_ra>
